<compile_context>
chip_gen: v6e
topology: v6e:2x2x1
jax: 0.10.0
libtpu: 0.0.40
codegen_flags: <defaults>
</compile_context>

<pallas_src>
import math
import functools

import jax
import jax.numpy as jnp
from jax import lax
from jax.experimental import pallas as pl
from jax.experimental.pallas import tpu as pltpu


def _round_up(x: int, m: int) -> int:
    return (x + m - 1) // m * m


def _sublane(dtype) -> int:
    # sublane tile per dtype: f32 -> 8, bf16 -> 16, int8/fp8 -> 32
    return {4: 8, 2: 16, 1: 32}.get(jnp.dtype(dtype).itemsize, 8)


def _make_kernel(is_layer_norm: bool, d_orig: int, u_orig: int, u_pad: int,
                 tu: int, mxu_dtype, approx_recip: bool,
                 attn_eps: float = 1e-8, ln_eps: float = 1e-5):
    """Kernel for one (batch, row-tile, kv-tile) grid step."""
    scale = 1.0 / (math.sqrt(max(1.0, float(d_orig))) + attn_eps)
    inv_d = 1.0 / float(d_orig)
    mask_cols = (u_pad != u_orig)

    def kernel(q_ref, k_ref, v_ref, w1_ref, b1_ref, w2_ref, b2_ref, *rest):
        if is_layer_norm:
            gamma_ref, beta_ref, o_ref, m_ref, l_ref, acc_ref = rest
        else:
            o_ref, m_ref, l_ref, acc_ref = rest

        u_idx = pl.program_id(2)
        n_u = pl.num_programs(2)

        @pl.when(u_idx == 0)
        def _init():
            m_ref[...] = jnp.full_like(m_ref, -jnp.inf)
            l_ref[...] = jnp.zeros_like(l_ref)
            acc_ref[...] = jnp.zeros_like(acc_ref)

        q32 = q_ref[0].astype(jnp.float32)        # (TR, Dp) residual + MXU src
        k = k_ref[0]                              # (TU, Dp)
        v = v_ref[0]                              # (TU, Dp)

        # attention scale folded into the (TR, Dp) Q operand (cheaper than
        # scaling the (TR, TU) score matrix); nt-form contraction, no .T
        q_mxu = (q32 * scale).astype(mxu_dtype)
        s = lax.dot_general(q_mxu, k.astype(mxu_dtype),
                            (((1,), (1,)), ((), ())),
                            preferred_element_type=jnp.float32)   # (TR, TU)
        if mask_cols:
            col = u_idx * tu + lax.broadcasted_iota(jnp.int32, s.shape, 1)
            s = jnp.where(col < u_orig, s, -1e30)

        # online (flash-style) softmax accumulation across U tiles
        m_cur = jnp.max(s, axis=-1, keepdims=True)
        m_new = jnp.maximum(m_ref[...], m_cur)
        alpha = jnp.exp(m_ref[...] - m_new)
        p = jnp.exp(s - m_new)
        l_ref[...] = alpha * l_ref[...] + jnp.sum(p, axis=-1, keepdims=True)
        pv = lax.dot_general(p.astype(mxu_dtype), v.astype(mxu_dtype),
                             (((1,), (0,)), ((), ())),
                             preferred_element_type=jnp.float32)  # (TR, Dp)
        acc_ref[...] = alpha * acc_ref[...] + pv
        m_ref[...] = m_new

        @pl.when(u_idx == n_u - 1)
        def _epilogue():
            # normalize on the (TR, Dp) accumulator (post-PV), exact by default
            if approx_recip:
                v_att = acc_ref[...] * pl.reciprocal(l_ref[...], approx=True)
            else:
                v_att = acc_ref[...] / l_ref[...]
            x = q32 + v_att

            if is_layer_norm:
                gamma = gamma_ref[...].astype(jnp.float32)
                beta = beta_ref[...].astype(jnp.float32)
                if x.shape[-1] != d_orig:      # hoisted lane mask, built once
                    lane = lax.broadcasted_iota(jnp.int32, (1, x.shape[-1]), 1)
                    lane_mask = (lane < d_orig).astype(jnp.float32)
                else:
                    lane_mask = None

                def layer_norm(y):
                    if lane_mask is not None:  # exclude padded lanes from stats
                        mu = jnp.sum(y * lane_mask, -1, keepdims=True) * inv_d
                        diff = (y - mu) * lane_mask
                        var = jnp.sum(diff * diff, -1, keepdims=True) * inv_d
                    else:
                        mu = jnp.mean(y, -1, keepdims=True)
                        var = jnp.mean(jnp.square(y - mu), -1, keepdims=True)
                    return (y - mu) * lax.rsqrt(var + ln_eps) * gamma + beta

                x = layer_norm(x)

            # FFN: linear2(relu(linear1(x))).  Weights are pre-transposed in
            # the wrapper, so both matmuls use the natural (1,0) contraction.
            w1 = w1_ref[...]
            w2 = w2_ref[...]
            h = lax.dot_general(x.astype(w1.dtype), w1,
                                (((1,), (0,)), ((), ())),
                                preferred_element_type=jnp.float32)
            h = jnp.maximum(h + b1_ref[...].astype(jnp.float32), 0.0)
            ffn = lax.dot_general(h.astype(w2.dtype), w2,
                                  (((1,), (0,)), ((), ())),
                                  preferred_element_type=jnp.float32)
            ffn = ffn + b2_ref[...].astype(jnp.float32)

            out = ffn + x
            if is_layer_norm:
                out = layer_norm(out)
            o_ref[0] = out.astype(o_ref.dtype)

    return kernel


def prepare_params(params, *, is_layer_norm=False, mxu_bf16=False):
    """One-time weight prep (hoisted out of the per-call hot path):
    pad to lane-dense multiples of 128, pre-transpose the FFN weights, and
    optionally pre-cast them to bf16 for the MXU."""
    D = params["w1"].shape[0]
    pd = _round_up(D, 128) - D
    w_dtype = jnp.bfloat16 if mxu_bf16 else params["w1"].dtype
    prepared = {
        "w1t": jnp.pad(params["w1"].T, ((0, pd), (0, pd))).astype(w_dtype),
        "w2t": jnp.pad(params["w2"].T, ((0, pd), (0, pd))).astype(w_dtype),
        "b1": jnp.pad(params["b1"].reshape(1, D), ((0, 0), (0, pd))),
        "b2": jnp.pad(params["b2"].reshape(1, D), ((0, 0), (0, pd))),
    }
    if is_layer_norm:
        prepared["ln_gamma"] = jnp.pad(params["ln_gamma"].reshape(1, D),
                                       ((0, 0), (0, pd)))
        prepared["ln_beta"] = jnp.pad(params["ln_beta"].reshape(1, D),
                                      ((0, 0), (0, pd)))
    return prepared


@functools.partial(jax.jit,
                   static_argnames=("is_layer_norm", "mxu_bf16", "approx_recip"))
def _forward(Q, K, V, prepared, *, is_layer_norm, mxu_bf16, approx_recip=False):
    """Q: (B, R, D), K/V: (B, U, D) -> (B, R, D)."""
    B, R, D = Q.shape
    _, U, _ = K.shape
    D_pad = prepared["w1t"].shape[0]
    assert D_pad == _round_up(D, 128)

    in_dtype = Q.dtype
    use_bf16 = mxu_bf16 and jnp.dtype(in_dtype) == jnp.dtype(jnp.float32)
    mxu_dtype = jnp.bfloat16 if use_bf16 else in_dtype

    # ---- tiling ----
    sub = _sublane(in_dtype)
    if R > 128:
        TR = 256 if R >= 256 else 128        # keep MXU pushes full (x128)
    else:
        TR = _round_up(R, sub)               # dtype sublane tile
    # v7x megacore: make sure >= 2 parallel grid steps exist
    if B * pl.cdiv(R, TR) < 2 and TR > sub:
        TR = max(sub, _round_up(TR // 2, sub))
    R_pad = _round_up(R, TR)

    U_pad = _round_up(U, 128)                # lane-dense key axis
    TU = 128                                 # flash K/V tile (bounds VMEM)
    for cand in (512, 384, 256):
        if U_pad % cand == 0:
            TU = cand
            break

    kv_dtype = mxu_dtype                     # pre-cast K/V once (halves DMA)

    def pad3(x, rows_to, dtype):
        _, rr, dd = x.shape
        if rr != rows_to or dd != D_pad:
            x = jnp.pad(x, ((0, 0), (0, rows_to - rr), (0, D_pad - dd)))
        return x.astype(dtype)

    Qp = pad3(Q, R_pad, in_dtype)
    Kp = pad3(K, U_pad, kv_dtype)
    Vp = pad3(V, U_pad, kv_dtype)

    const2 = lambda shape: pl.BlockSpec(shape, lambda b, r, u: (0, 0))
    in_specs = [
        pl.BlockSpec((1, TR, D_pad), lambda b, r, u: (b, r, 0)),    # Q
        pl.BlockSpec((1, TU, D_pad), lambda b, r, u: (b, u, 0)),    # K
        pl.BlockSpec((1, TU, D_pad), lambda b, r, u: (b, u, 0)),    # V
        const2((D_pad, D_pad)),                                     # w1^T
        const2((1, D_pad)),                                         # b1
        const2((D_pad, D_pad)),                                     # w2^T
        const2((1, D_pad)),                                         # b2
    ]
    args = [Qp, Kp, Vp, prepared["w1t"], prepared["b1"],
            prepared["w2t"], prepared["b2"]]
    if is_layer_norm:
        in_specs += [const2((1, D_pad)), const2((1, D_pad))]
        args += [prepared["ln_gamma"], prepared["ln_beta"]]

    scratch_shapes = [
        pltpu.VMEM((TR, 1), jnp.float32),        # running max
        pltpu.VMEM((TR, 1), jnp.float32),        # running sum
        pltpu.VMEM((TR, D_pad), jnp.float32),    # PV accumulator
    ]

    # ---- generation-aware scoped-VMEM budget ----
    in_item = jnp.dtype(in_dtype).itemsize
    kv_item = jnp.dtype(kv_dtype).itemsize
    w_item = jnp.dtype(prepared["w1t"].dtype).itemsize
    est = (2 * TR * D_pad * in_item                         # Q (2 buffers)
           + 2 * 2 * TU * D_pad * kv_item                   # K, V
           + 2 * TR * D_pad * in_item                       # out
           + 2 * (2 * D_pad * D_pad + 6 * D_pad) * w_item   # weights + vectors
           + 4 * (TR * D_pad + 2 * TR)                      # scratch (f32)
           + 4 * TR * (2 * TU + 4 * D_pad))                 # live f32 temps
    try:
        cap = pltpu.get_tpu_info().vmem_capacity_bytes      # 128 MiB v5e/v6e, 64 MiB v7x
    except Exception:
        cap = 64 * 1024 * 1024                              # conservative default
    vmem_limit = int(min(max(int(est * 1.5), 32 * 1024 * 1024),
                         int(cap * 0.8)))                   # leave compiler headroom

    out = pl.pallas_call(
        _make_kernel(is_layer_norm, D, U, U_pad, TU, mxu_dtype, approx_recip),
        out_shape=jax.ShapeDtypeStruct((B, R_pad, D_pad), in_dtype),
        grid_spec=pltpu.PrefetchScalarGridSpec(
            num_scalar_prefetch=0,
            grid=(B, R_pad // TR, U_pad // TU),
            in_specs=in_specs,
            out_specs=pl.BlockSpec((1, TR, D_pad), lambda b, r, u: (b, r, 0)),
            scratch_shapes=scratch_shapes,
        ),
        compiler_params=pltpu.CompilerParams(
            dimension_semantics=("parallel", "parallel", "arbitrary"),
            vmem_limit_bytes=vmem_limit,
        ),
    )(*args)

    if R_pad != R or D_pad != D:
        out = out[:, :R, :D]
    return out


def transformer_block(Q, K, V, params, is_layer_norm=False, mxu_bf16=False,
                      approx_recip=False):
    prepared = prepare_params(params, is_layer_norm=is_layer_norm,
                              mxu_bf16=mxu_bf16)
    return _forward(Q, K, V, prepared, is_layer_norm=is_layer_norm,
                    mxu_bf16=mxu_bf16, approx_recip=approx_recip)


def init_params(key, input_size, is_layer_norm=False):
    """Mirrors the PyTorch module's __init__ (xavier_normal_ weights)."""
    k1, k2, k3, k4 = jax.random.split(key, 4)
    std = math.sqrt(2.0 / (input_size + input_size))
    bound = 1.0 / math.sqrt(input_size)
    params = {
        "w1": std * jax.random.normal(k1, (input_size, input_size), jnp.float32),
        "b1": jax.random.uniform(k2, (input_size,), jnp.float32, -bound, bound),
        "w2": std * jax.random.normal(k3, (input_size, input_size), jnp.float32),
        "b2": jax.random.uniform(k4, (input_size,), jnp.float32, -bound, bound),
    }
    if is_layer_norm:
        params["ln_gamma"] = jnp.ones((input_size,), jnp.float32)
        params["ln_beta"] = jnp.zeros((input_size,), jnp.float32)
    return params


def _reference(Q, K, V, params, is_layer_norm=False, eps=1e-8):
    """Pure-JAX reference matching the PyTorch forward."""
    D = Q.shape[-1]
    scale = 1.0 / (math.sqrt(max(1.0, float(D))) + eps)
    s = jnp.einsum("brd,bud->bru", Q, K) * scale
    p = jax.nn.softmax(s, axis=-1)
    v_att = jnp.einsum("bru,bud->brd", p, V)
    x = Q + v_att

    def ln(y):
        mu = jnp.mean(y, axis=-1, keepdims=True)
        var = jnp.mean((y - mu) ** 2, axis=-1, keepdims=True)
        return (y - mu) / jnp.sqrt(var + 1e-5) * params["ln_gamma"] + params["ln_beta"]

    if is_layer_norm:
        x = ln(x)
    h = jnp.maximum(x @ params["w1"].T + params["b1"], 0.0)
    ffn = h @ params["w2"].T + params["b2"]
    out = ffn + x
    if is_layer_norm:
        out = ln(out)
    return out


if __name__ == "__main__":
    B, R, U, D = 2, 8, 8, 32   # batch, max_r_words, max_u_words, embedding_dim

    key = jax.random.PRNGKey(0)
    kq, kk, kv, kp = jax.random.split(key, 4)
    Q = jax.random.normal(kq, (B, R, D), jnp.float32)
    K = jax.random.normal(kk, (B, U, D), jnp.float32)
    V = jax.random.normal(kv, (B, U, D), jnp.float32)

    # default config (is_layer_norm=False), f32 MXU operands -> tight parity
    params = init_params(kp, D, is_layer_norm=False)
    out = jax.block_until_ready(transformer_block(Q, K, V, params))
    ref = _reference(Q, K, V, params, is_layer_norm=False)
    assert out.shape == (B, R, D)
    assert jnp.allclose(out, ref, atol=2e-3, rtol=2e-3), "mismatch vs reference (no LN)"

    # layer-norm variant (same LN weights applied twice, like the torch module)
    params_ln = init_params(kp, D, is_layer_norm=True)
    out_ln = jax.block_until_ready(
        transformer_block(Q, K, V, params_ln, is_layer_norm=True))
    ref_ln = _reference(Q, K, V, params_ln, is_layer_norm=True)
    assert jnp.allclose(out_ln, ref_ln, atol=2e-3, rtol=2e-3), "mismatch vs reference (LN)"

    # bf16 MXU-operand fast path (f32 accumulate) -- looser tolerance by design
    out_bf16 = jax.block_until_ready(
        transformer_block(Q, K, V, params, mxu_bf16=True))
    assert float(jnp.max(jnp.abs(out_bf16 - ref))) < 0.2, "bf16-MXU path diverged"

    print("KERNEL_OK")
</pallas_src>

<mosaic_0001>
module attributes {stable_mosaic.version = 11 : i64} {
  func.func @kernel(%arg0: i32, %arg1: i32, %arg2: i32, %arg3: memref<1x8x128xf32, #tpu.memory_space<vmem>>, %arg4: memref<1x128x128xf32, #tpu.memory_space<vmem>>, %arg5: memref<1x128x128xf32, #tpu.memory_space<vmem>>, %arg6: memref<128x128xf32, #tpu.memory_space<vmem>>, %arg7: memref<1x128xf32, #tpu.memory_space<vmem>>, %arg8: memref<128x128xf32, #tpu.memory_space<vmem>>, %arg9: memref<1x128xf32, #tpu.memory_space<vmem>>, %arg10: memref<1x8x128xf32, #tpu.memory_space<vmem>>, %arg11: memref<8x1xf32, #tpu.memory_space<vmem>>, %arg12: memref<8x1xf32, #tpu.memory_space<vmem>>, %arg13: memref<8x128xf32, #tpu.memory_space<vmem>>) attributes {dimension_semantics = [#tpu.dimension_semantics<parallel>, #tpu.dimension_semantics<parallel>, #tpu.dimension_semantics<arbitrary>], iteration_bounds = array<i64: 2, 1, 1>, scalar_prefetch = 0 : i64, scratch_operands = 3 : i64, tpu.core_type = #tpu.core_type<tc>, window_params = [{transform_indices = @transform_0, window_bounds = array<i64: 1, 8, 128>}, {transform_indices = @transform_1, window_bounds = array<i64: 1, 128, 128>}, {transform_indices = @transform_2, window_bounds = array<i64: 1, 128, 128>}, {pipeline_mode = #tpu.pipeline_mode<synchronous>, transform_indices = @transform_3, window_bounds = array<i64: 128, 128>}, {pipeline_mode = #tpu.pipeline_mode<synchronous>, transform_indices = @transform_4, window_bounds = array<i64: 1, 128>}, {pipeline_mode = #tpu.pipeline_mode<synchronous>, transform_indices = @transform_5, window_bounds = array<i64: 128, 128>}, {pipeline_mode = #tpu.pipeline_mode<synchronous>, transform_indices = @transform_6, window_bounds = array<i64: 1, 128>}, {transform_indices = @transform_7, window_bounds = array<i64: 1, 8, 128>}]} {
    %c0_i32 = arith.constant 0 : i32
    %0 = arith.cmpi eq, %arg2, %c0_i32 : i32
    %1 = arith.extui %0 : i1 to i32
    %c0_i32_0 = arith.constant 0 : i32
    %2 = arith.cmpi ne, %1, %c0_i32_0 : i32
    scf.if %2 {
      %cst_30 = arith.constant 0xFF800000 : f32
      %46 = vector.broadcast %cst_30 : f32 to vector<8x1xf32>
      %c0_31 = arith.constant 0 : index
      %c0_32 = arith.constant 0 : index
      %47 = vector.load %arg11[%c0_31, %c0_32] : memref<8x1xf32, #tpu.memory_space<vmem>>, vector<8x1xf32>
      tpu.vector_store %arg11[%c0_31, %c0_32], %46 {strides = array<i32>} : memref<8x1xf32, #tpu.memory_space<vmem>>, vector<8x1xf32>,
      %cst_33 = arith.constant 0.000000e+00 : f32
      %48 = vector.broadcast %cst_33 : f32 to vector<8x1xf32>
      %c0_34 = arith.constant 0 : index
      %c0_35 = arith.constant 0 : index
      %49 = vector.load %arg12[%c0_34, %c0_35] : memref<8x1xf32, #tpu.memory_space<vmem>>, vector<8x1xf32>
      tpu.vector_store %arg12[%c0_34, %c0_35], %48 {strides = array<i32>} : memref<8x1xf32, #tpu.memory_space<vmem>>, vector<8x1xf32>,
      %cst_36 = arith.constant 0.000000e+00 : f32
      %50 = vector.broadcast %cst_36 : f32 to vector<8x128xf32>
      %c0_37 = arith.constant 0 : index
      %c0_38 = arith.constant 0 : index
      %51 = vector.load %arg13[%c0_37, %c0_38] : memref<8x128xf32, #tpu.memory_space<vmem>>, vector<8x128xf32>
      tpu.vector_store %arg13[%c0_37, %c0_38], %50 {strides = array<i32>} : memref<8x128xf32, #tpu.memory_space<vmem>>, vector<8x128xf32>,
    } else {
    }
    %c0 = arith.constant 0 : index
    %c0_1 = arith.constant 0 : index
    %c0_2 = arith.constant 0 : index
    %3 = vector.load %arg3[%c0, %c0_1, %c0_2] : memref<1x8x128xf32, #tpu.memory_space<vmem>>, vector<1x8x128xf32>
    %4 = vector.shape_cast %3 : vector<1x8x128xf32> to vector<8x128xf32>
    %c0_3 = arith.constant 0 : index
    %c0_4 = arith.constant 0 : index
    %c0_5 = arith.constant 0 : index
    %5 = vector.load %arg4[%c0_3, %c0_4, %c0_5] : memref<1x128x128xf32, #tpu.memory_space<vmem>>, vector<1x128x128xf32>
    %6 = vector.shape_cast %5 : vector<1x128x128xf32> to vector<128x128xf32>
    %c0_6 = arith.constant 0 : index
    %c0_7 = arith.constant 0 : index
    %c0_8 = arith.constant 0 : index
    %7 = vector.load %arg5[%c0_6, %c0_7, %c0_8] : memref<1x128x128xf32, #tpu.memory_space<vmem>>, vector<1x128x128xf32>
    %8 = vector.shape_cast %7 : vector<1x128x128xf32> to vector<128x128xf32>
    %cst = arith.constant 0.176776692 : f32
    %9 = vector.broadcast %cst : f32 to vector<8x128xf32>
    %10 = arith.mulf %4, %9 : vector<8x128xf32>
    %cst_9 = arith.constant dense<0.000000e+00> : vector<8x128xf32>
    %11 = tpu.matmul %10, %6, %cst_9 {dimension_numbers = #tpu.dot_dimension_numbers<[1], [1], [0], [0], [0, 0, 1, 0], [], []>} : vector<8x128xf32>, vector<128x128xf32>, vector<8x128xf32> -> vector<8x128xf32>
    %c128_i32 = arith.constant 128 : i32
    %12 = arith.muli %arg2, %c128_i32 : i32
    %13 = tpu.iota {dimensions = array<i32: 1>} : vector<8x128xi32>
    %14 = vector.broadcast %12 : i32 to vector<8x128xi32>
    %15 = arith.addi %14, %13 : vector<8x128xi32>
    %c8_i32 = arith.constant 8 : i32
    %16 = vector.broadcast %c8_i32 : i32 to vector<8x128xi32>
    %17 = arith.cmpi slt, %15, %16 : vector<8x128xi32>
    %cst_10 = arith.constant -1.000000e+30 : f32
    %18 = vector.broadcast %cst_10 : f32 to vector<8x128xf32>
    %19 = arith.select %17, %11, %18 : vector<8x128xi1>, vector<8x128xf32>
    %cst_11 = arith.constant dense<0xFF800000> : vector<8xf32>
    %20 = vector.multi_reduction <maximumf>, %19, %cst_11 [1] : vector<8x128xf32> to vector<8xf32>
    %21 = vector.shape_cast %20 : vector<8xf32> to vector<8x1xf32>
    %c0_12 = arith.constant 0 : index
    %c0_13 = arith.constant 0 : index
    %22 = vector.load %arg11[%c0_12, %c0_13] : memref<8x1xf32, #tpu.memory_space<vmem>>, vector<8x1xf32>
    %23 = arith.maximumf %22, %21 : vector<8x1xf32>
    %c0_14 = arith.constant 0 : index
    %c0_15 = arith.constant 0 : index
    %24 = vector.load %arg11[%c0_14, %c0_15] : memref<8x1xf32, #tpu.memory_space<vmem>>, vector<8x1xf32>
    %25 = arith.subf %24, %23 : vector<8x1xf32>
    %26 = math.exp %25 : vector<8x1xf32>
    %27 = vector.broadcast %23 : vector<8x1xf32> to vector<8x128xf32>
    %28 = arith.subf %19, %27 : vector<8x128xf32>
    %29 = math.exp %28 : vector<8x128xf32>
    %c0_16 = arith.constant 0 : index
    %c0_17 = arith.constant 0 : index
    %30 = vector.load %arg12[%c0_16, %c0_17] : memref<8x1xf32, #tpu.memory_space<vmem>>, vector<8x1xf32>
    %31 = arith.mulf %26, %30 : vector<8x1xf32>
    %cst_18 = arith.constant dense<0.000000e+00> : vector<8xf32>
    %32 = vector.multi_reduction <add>, %29, %cst_18 [1] : vector<8x128xf32> to vector<8xf32>
    %33 = vector.shape_cast %32 : vector<8xf32> to vector<8x1xf32>
    %34 = arith.addf %31, %33 : vector<8x1xf32>
    %c0_19 = arith.constant 0 : index
    %c0_20 = arith.constant 0 : index
    %35 = vector.load %arg12[%c0_19, %c0_20] : memref<8x1xf32, #tpu.memory_space<vmem>>, vector<8x1xf32>
    tpu.vector_store %arg12[%c0_19, %c0_20], %34 {strides = array<i32>} : memref<8x1xf32, #tpu.memory_space<vmem>>, vector<8x1xf32>,
    %cst_21 = arith.constant dense<0.000000e+00> : vector<8x128xf32>
    %36 = tpu.matmul %29, %8, %cst_21 {dimension_numbers = #tpu.dot_dimension_numbers<[1], [0], [0], [1], [0, 0, 1, 1], [], []>} : vector<8x128xf32>, vector<128x128xf32>, vector<8x128xf32> -> vector<8x128xf32>
    %c0_22 = arith.constant 0 : index
    %c0_23 = arith.constant 0 : index
    %37 = vector.load %arg13[%c0_22, %c0_23] : memref<8x128xf32, #tpu.memory_space<vmem>>, vector<8x128xf32>
    %38 = vector.broadcast %26 : vector<8x1xf32> to vector<8x128xf32>
    %39 = arith.mulf %38, %37 : vector<8x128xf32>
    %40 = arith.addf %39, %36 : vector<8x128xf32>
    %c0_24 = arith.constant 0 : index
    %c0_25 = arith.constant 0 : index
    %41 = vector.load %arg13[%c0_24, %c0_25] : memref<8x128xf32, #tpu.memory_space<vmem>>, vector<8x128xf32>
    tpu.vector_store %arg13[%c0_24, %c0_25], %40 {strides = array<i32>} : memref<8x128xf32, #tpu.memory_space<vmem>>, vector<8x128xf32>,
    %c0_26 = arith.constant 0 : index
    %c0_27 = arith.constant 0 : index
    %42 = vector.load %arg11[%c0_26, %c0_27] : memref<8x1xf32, #tpu.memory_space<vmem>>, vector<8x1xf32>
    tpu.vector_store %arg11[%c0_26, %c0_27], %23 {strides = array<i32>} : memref<8x1xf32, #tpu.memory_space<vmem>>, vector<8x1xf32>,
    %c0_i32_28 = arith.constant 0 : i32
    %43 = arith.cmpi eq, %arg2, %c0_i32_28 : i32
    %44 = arith.extui %43 : i1 to i32
    %c0_i32_29 = arith.constant 0 : i32
    %45 = arith.cmpi ne, %44, %c0_i32_29 : i32
    scf.if %45 {
      %c0_30 = arith.constant 0 : index
      %c0_31 = arith.constant 0 : index
      %46 = vector.load %arg13[%c0_30, %c0_31] : memref<8x128xf32, #tpu.memory_space<vmem>>, vector<8x128xf32>
      %c0_32 = arith.constant 0 : index
      %c0_33 = arith.constant 0 : index
      %47 = vector.load %arg12[%c0_32, %c0_33] : memref<8x1xf32, #tpu.memory_space<vmem>>, vector<8x1xf32>
      %48 = vector.broadcast %47 : vector<8x1xf32> to vector<8x128xf32>
      %49 = arith.divf %46, %48 : vector<8x128xf32>
      %50 = arith.addf %4, %49 : vector<8x128xf32>
      %c0_34 = arith.constant 0 : index
      %c0_35 = arith.constant 0 : index
      %51 = vector.load %arg6[%c0_34, %c0_35] : memref<128x128xf32, #tpu.memory_space<vmem>>, vector<128x128xf32>
      %c0_36 = arith.constant 0 : index
      %c0_37 = arith.constant 0 : index
      %52 = vector.load %arg8[%c0_36, %c0_37] : memref<128x128xf32, #tpu.memory_space<vmem>>, vector<128x128xf32>
      %cst_38 = arith.constant dense<0.000000e+00> : vector<8x128xf32>
      %53 = tpu.matmul %50, %51, %cst_38 {dimension_numbers = #tpu.dot_dimension_numbers<[1], [0], [0], [1], [0, 0, 1, 1], [], []>} : vector<8x128xf32>, vector<128x128xf32>, vector<8x128xf32> -> vector<8x128xf32>
      %c0_39 = arith.constant 0 : index
      %c0_40 = arith.constant 0 : index
      %54 = vector.load %arg7[%c0_39, %c0_40] : memref<1x128xf32, #tpu.memory_space<vmem>>, vector<1x128xf32>
      %55 = vector.broadcast %54 : vector<1x128xf32> to vector<8x128xf32>
      %56 = arith.addf %53, %55 : vector<8x128xf32>
      %cst_41 = arith.constant 0.000000e+00 : f32
      %57 = vector.broadcast %cst_41 : f32 to vector<8x128xf32>
      %58 = arith.maximumf %56, %57 : vector<8x128xf32>
      %cst_42 = arith.constant dense<0.000000e+00> : vector<8x128xf32>
      %59 = tpu.matmul %58, %52, %cst_42 {dimension_numbers = #tpu.dot_dimension_numbers<[1], [0], [0], [1], [0, 0, 1, 1], [], []>} : vector<8x128xf32>, vector<128x128xf32>, vector<8x128xf32> -> vector<8x128xf32>
      %c0_43 = arith.constant 0 : index
      %c0_44 = arith.constant 0 : index
      %60 = vector.load %arg9[%c0_43, %c0_44] : memref<1x128xf32, #tpu.memory_space<vmem>>, vector<1x128xf32>
      %61 = vector.broadcast %60 : vector<1x128xf32> to vector<8x128xf32>
      %62 = arith.addf %59, %61 : vector<8x128xf32>
      %63 = arith.addf %62, %50 : vector<8x128xf32>
      %c0_45 = arith.constant 0 : index
      %c0_46 = arith.constant 0 : index
      %c0_47 = arith.constant 0 : index
      %64 = vector.load %arg10[%c0_45, %c0_46, %c0_47] : memref<1x8x128xf32, #tpu.memory_space<vmem>>, vector<1x8x128xf32>
      %65 = vector.shape_cast %64 : vector<1x8x128xf32> to vector<8x128xf32>
      %66 = vector.shape_cast %63 : vector<8x128xf32> to vector<1x8x128xf32>
      tpu.vector_store %arg10[%c0_45, %c0_46, %c0_47], %66 {strides = array<i32>} : memref<1x8x128xf32, #tpu.memory_space<vmem>>, vector<1x8x128xf32>,
    } else {
    }
    return
  }
  func.func @transform_0(%arg0: i32, %arg1: i32, %arg2: i32) -> (i32, i32, i32) {
    %c0_i32 = arith.constant 0 : i32
    %c0_i32_0 = arith.constant 0 : i32
    return %arg0, %arg1, %c0_i32 : i32, i32, i32
  }
  func.func @transform_1(%arg0: i32, %arg1: i32, %arg2: i32) -> (i32, i32, i32) {
    %c0_i32 = arith.constant 0 : i32
    %c0_i32_0 = arith.constant 0 : i32
    return %arg0, %arg2, %c0_i32 : i32, i32, i32
  }
  func.func @transform_2(%arg0: i32, %arg1: i32, %arg2: i32) -> (i32, i32, i32) {
    %c0_i32 = arith.constant 0 : i32
    %c0_i32_0 = arith.constant 0 : i32
    return %arg0, %arg2, %c0_i32 : i32, i32, i32
  }
  func.func @transform_3(%arg0: i32, %arg1: i32, %arg2: i32) -> (i32, i32) {
    %c0_i32 = arith.constant 0 : i32
    %c0_i32_0 = arith.constant 0 : i32
    %c0_i32_1 = arith.constant 0 : i32
    return %c0_i32, %c0_i32_0 : i32, i32
  }
  func.func @transform_4(%arg0: i32, %arg1: i32, %arg2: i32) -> (i32, i32) {
    %c0_i32 = arith.constant 0 : i32
    %c0_i32_0 = arith.constant 0 : i32
    %c0_i32_1 = arith.constant 0 : i32
    return %c0_i32, %c0_i32_0 : i32, i32
  }
  func.func @transform_5(%arg0: i32, %arg1: i32, %arg2: i32) -> (i32, i32) {
    %c0_i32 = arith.constant 0 : i32
    %c0_i32_0 = arith.constant 0 : i32
    %c0_i32_1 = arith.constant 0 : i32
    return %c0_i32, %c0_i32_0 : i32, i32
  }
  func.func @transform_6(%arg0: i32, %arg1: i32, %arg2: i32) -> (i32, i32) {
    %c0_i32 = arith.constant 0 : i32
    %c0_i32_0 = arith.constant 0 : i32
    %c0_i32_1 = arith.constant 0 : i32
    return %c0_i32, %c0_i32_0 : i32, i32
  }
  func.func @transform_7(%arg0: i32, %arg1: i32, %arg2: i32) -> (i32, i32, i32) {
    %c0_i32 = arith.constant 0 : i32
    %c0_i32_0 = arith.constant 0 : i32
    return %arg0, %arg1, %c0_i32 : i32, i32, i32
  }
}

</mosaic_0001>

<bundles_post_ra>
// kernel: _forward.1
= control target key start
LH: loop header
LB: loop body
LE: loop exit
PB: predicated region body
PF: predicated region fallthrough
CT: control target
= control target key end

     0   :  { %12 = vsyncpa [#allocation6], 0  ;;  %s1679_s0 = inlined_call_operand.vmem [shape: f32[2,8,128], index: 0, kind: input, shape index: {}]   ;;  %s1680_s1 = inlined_call_operand.vmem [shape: f32[2,128,128], index: 1, kind: input, shape index: {}]   ;;  %s1681_s2 = inlined_call_operand.vmem [shape: f32[2,128,128], index: 2, kind: input, shape index: {}]   ;;  %s1682_s3 = inlined_call_operand.vmem [shape: f32[128,128], index: 3, kind: input, shape index: {}]   ;;  %s1683_s4 = inlined_call_operand.vmem [shape: f32[1,128], index: 4, kind: input, shape index: {}]   ;;  %s1684_s5 = inlined_call_operand.vmem [shape: f32[128,128], index: 5, kind: input, shape index: {}]   ;;  %s1685_s6 = inlined_call_operand.vmem [shape: f32[1,128], index: 6, kind: input, shape index: {}]   ;;  %s1686_s7 = inlined_call_operand.hbm [shape: f32[2,8,128], index: 7, kind: output, shape index: {}]  }
   0x1   :  { %14 = vsyncpa [#allocation6 + $0x1], 0  ;;  %s1343_s24 = smov 0   ;;  %s1345_s25 = smov 0  }
   0x2   :  { %s1347_s26 = smov 0   ;;  %s1349_s27 = smov 0  }
   0x3   :  { %s1351_s28 = smov 0   ;;  %s1353_s29 = smov 0  }
   0x4 LB: > { %s926_s30 = sadd.s32 4294967295, %s1296_s29   ;;  %s927_s8 = sadd.s32 4294967294, %s1296_s29   ;;  %s1296_s29 = sphi %s1353_s29, %s20_s29   ;;  %s1292_s28 = sphi %s1351_s28, %s1693_s28   ;;  %s1288_s27 = sphi %s1349_s27, %s1692_s27   ;;  %s1284_s26 = sphi %s1347_s26, %s1691_s26   ;;  %s1280_s25 = sphi %s1345_s25, %s1690_s25   ;;  %s1276_s24 = sphi %s1343_s24, %s1689_s24  }
   0x5   : > { %s39_s9 = sadd.s32 1, %s1292_s28  ;;  %s216_s10 = sadd.s32 1, %s1284_s26 }
   0x6   : > { %p41_p0 = scmp.ge.s32.totalorder %s39_s9, 2  ;;  %p226_p1 = scmp.ne.s32.totalorder %s1284_s26, %s1280_s25 }
   0x7   : > { %p227_p2 = scmp.eq.s32.totalorder %s926_s30, 1  ;;  %p232_p3 = scmp.ne.s32.totalorder %s1280_s25, %s1276_s24 }
   0x8   : > { %s1695_s9 = smov (%p41_p0, %s39_s9), 0  ;;  %p233_p5 = scmp.eq.s32.totalorder %s927_s8, 1 }
   0x9   : > { %p1383_p4 = por %p227_p2, %p226_p1  ;;  %s211_s12 = ssub.s32 %s1292_s28, %s1695_s9 }
   0xa   : > { %p930_p6 = scmp.ge.s32.totalorder %s1296_s29, 1  ;;  %p214_p7 = scmp.eq.s32.totalorder %s211_s12, 0 }
   0xb   : > { %p1390_p8 = por %p233_p5, %p232_p3  ;;  %p299_p9 = scmp.lt.s32.totalorder %s1296_s29, 3 }
   0xc   : > { %s1396_s14 = scalar_select %p214_p7, %s1284_s26, %s216_s10  }
   0xd   : > { %p300_p10 = pnand %p930_p6, %p299_p9 }
   0xe   : > { %p351_p11 = scmp.lt.s32.totalorder (!%p300_p10), %s1288_s27, 1  ;;  %s1302_s12 = smov (!%p300_p10), [#allocation5]  }
   0xf   : > { %303 = sbr.rel (%p300_p10) target bundleno = 1261 (0x4ed), region = 48  ;;  %s1224_s17 = sshll.u32 (!%p300_p10), %s1302_s12, 4  ;;  %s1225_s17 = int_to_ptr.vmem [resolvable:$false] %s1224_s17 }
  0x14   : > { %v1298_v0 = vmov 0.0   ;;  %vm1299_vm0 = vmmov 0   ;;  %s1403_s15 = scalar_select %p351_p11, %s1288_s27, 1  ;;  %vm382_vm1 = vcmask 7168   ;;  %v1300_v19 = vmov -inf   ;;  %v627_v50 = vld [vmem:[%s1682_s3 + $0x78] sm:$0xff] }
  0x15   : > { %1013 = vmatprep.subr.mxu0 %v1298_v0  ;;  %1045 = vmatprep.mubr.msk.f32.mxu0 %vm1299_vm0, %v1298_v0  ;;  %383 = vst.msk [vmem:[#allocation2] sm:$0xff] %vm382_vm1, %v1300_v19  ;;  %384 = vst.msk [vmem:[#allocation3] sm:$0xff] %vm382_vm1, %v1298_v0  ;;  %v491_v20 = vlaneseq  ;;  %v1301_v25 = vmov 0   ;;  %v626_v51 = vld [vmem:[%s1682_s3 + $0x70] sm:$0xff]  ;;  %v625_v52 = vld [vmem:[%s1682_s3 + $0x68] sm:$0xff] }
  0x16   : > { %1048 = vmatprep.subr.mxu1 %v1298_v0  ;;  %1080 = vmatprep.mubr.msk.f32.mxu1 %vm1299_vm0, %v1298_v0  ;;  %s943_s16 = sshll.u32 %s1403_s15, 7  ;;  %s932_s20 = sshll.u32 %s1403_s15, 3  ;;  %v624_v53 = vld [vmem:[%s1682_s3 + $0x60] sm:$0xff]  ;;  %v623_v54 = vld [vmem:[%s1682_s3 + $0x58] sm:$0xff]  ;;  %v622_v55 = vld [vmem:[%s1682_s3 + $0x50] sm:$0xff] }
  0x17   : > { %s1414_s19 = scalar_lea.vmem %s1680_s1, %s943_s16  ;;  %s357_s23 = scalar_lea.vmem %s1679_s0, %s932_s20  ;;  %v492_v21 = vand.u32 127, %v491_v20  ;;  %1212 = vset.pattern.permute.xlu0 %v1301_v25  ;;  %1213 = vset.pattern.permute.xlu1 %v1301_v25  ;;  %v621_v56 = vld [vmem:[%s1682_s3 + $0x48] sm:$0xff]  ;;  %v620_v63 = vld [vmem:[%s1682_s3 + $0x40] sm:$0xff]  ;;  %v635_v19 = vld [vmem:[%s1684_s5 + $0x38] sm:$0xff] }
  0x18   : > { %v402_v1 = vld [vmem:[%s1414_s19 + $0x78] sm:$0xff]  ;;  %v401_v2 = vld [vmem:[%s1414_s19 + $0x70] sm:$0xff]  ;;  %v400_v3 = vld [vmem:[%s1414_s19 + $0x68] sm:$0xff]  ;;  %s1468_s10 = scalar_lea.vmem %s1681_s2, %s943_s16  ;;  %s348_s15 = sand.u32 1, %s1280_s25  }
  0x19   : > { %1014 = vmatpush3.xpose.msra.mxu0 %v402_v1  ;;  %v399_v4 = vld [vmem:[%s1414_s19 + $0x60] sm:$0xff]  ;;  %v398_v5 = vld [vmem:[%s1414_s19 + $0x58] sm:$0xff]  ;;  %v397_v6 = vld [vmem:[%s1414_s19 + $0x50] sm:$0xff]  ;;  %vm495_vm2 = vcmp.lt.s32.totalorder %v492_v21, 8  ;;  %s931_s16 = sshll.u32 %s348_s15, 3  ;;  %s802_s8 = scalar_lea.sflag [#allocation6], %s348_s15 }
  0x1a   : > { %1015 = vmatprep.subr.mxu0 %v1298_v0  ;;  %v396_v7 = vld [vmem:[%s1414_s19 + $0x48] sm:$0xff]  ;;  %v395_v8 = vld [vmem:[%s1414_s19 + $0x40] sm:$0xff]  ;;  %v394_v9 = vld [vmem:[%s1414_s19 + $0x38] sm:$0xff]  ;;  %s350_s20 = scalar_lea.vmem [#allocation5], %s931_s16 }
  0x1b   : > { %v393_v10 = vld [vmem:[%s1414_s19 + $0x30] sm:$0xff]  ;;  %v392_v11 = vld [vmem:[%s1414_s19 + $0x28] sm:$0xff]  ;;  %v391_v12 = vld [vmem:[%s1414_s19 + $0x20] sm:$0xff]  ;;  %s816_s21 = sshll.u32 %s350_s20, 4  ;;  %s817_s21 = int_to_ptr.vmem [resolvable:$true] %s816_s21 }
  0x1c   : > { %v390_v13 = vld [vmem:[%s1414_s19 + $0x18] sm:$0xff]  ;;  %v389_v14 = vld [vmem:[%s1414_s19 + $0x10] sm:$0xff]  ;;  %v388_v15 = vld [vmem:[%s1414_s19 + $0x8] sm:$0xff]  ;;  %p1227_p1 = scmp.lt.s32.totalorder %s817_s21, %s1225_s17 }
  0x1d   : > { %1016 = vmatpush3.xpose.msra.mxu0 %v401_v2  ;;  %v1449_v16 = vld [vmem:[%s357_s23] sm:$0xff]  ;;  %v418_v26 = vld [vmem:[%s1468_s10 + $0x78] sm:$0xff]  ;;  %v417_v27 = vld [vmem:[%s1468_s10 + $0x70] sm:$0xff] }
  0x1e   : > { %1017 = vmatprep.subr.mxu0 %v1298_v0  ;;  %v387_v17 = vld [vmem:[%s1414_s19] sm:$0xff]  ;;  %v419_v18 = vmul.f32 0.17677669, %v1449_v16  ;;  %1049 = vmatpush3.msra.mxu1 %v418_v26  ;;  %v416_v28 = vld [vmem:[%s1468_s10 + $0x68] sm:$0xff]  ;;  %v414_v30 = vld [vmem:[%s1468_s10 + $0x58] sm:$0xff]  ;;  %s940_s19 = sshll.u32 %s1288_s27, 7 }
  0x1f   : > { %1050 = vmatprep.subr.mxu1 %v1298_v0  ;;  %v415_v29 = vld [vmem:[%s1468_s10 + $0x60] sm:$0xff]  ;;  %v413_v31 = vld [vmem:[%s1468_s10 + $0x50] sm:$0xff]  ;;  %v412_v32 = vld [vmem:[%s1468_s10 + $0x48] sm:$0xff]  ;;  %s814_s30 = scalar_lea.hbm %s1686_s7, %s940_s19  ;;  %s1226_s27 = scalar_lea.vmem %s1225_s17, 256 }
  0x20   : > { %1051 = vmatpush3.msra.mxu1 %v417_v27  ;;  %v499_v33 = vld [vmem:[#allocation2] sm:$0xff]  ;;  %v410_v37 = vld [vmem:[%s1468_s10 + $0x38] sm:$0xff]  ;;  %v409_v39 = vld [vmem:[%s1468_s10 + $0x30] sm:$0xff] }
  0x21   : > { %1018 = vmatpush3.xpose.msra.mxu0 %v400_v3  ;;  %1052 = vmatprep.subr.mxu1 %v1298_v0  ;;  %v411_v34 = vld [vmem:[%s1468_s10 + $0x40] sm:$0xff]  ;;  %v408_v40 = vld [vmem:[%s1468_s10 + $0x28] sm:$0xff]  ;;  %v406_v42 = vld [vmem:[%s1468_s10 + $0x18] sm:$0xff] }
  0x22   : > { %1019 = vmatprep.subr.mxu0 %v1298_v0  ;;  %1053 = vmatpush3.msra.mxu1 %v416_v28  ;;  %v407_v41 = vld [vmem:[%s1468_s10 + $0x20] sm:$0xff]  ;;  %v405_v43 = vld [vmem:[%s1468_s10 + $0x10] sm:$0xff]  ;;  %v404_v44 = vld [vmem:[%s1468_s10 + $0x8] sm:$0xff] }
  0x23   : > { %1054 = vmatprep.subr.mxu1 %v1298_v0  ;;  %v403_v45 = vld [vmem:[%s1468_s10] sm:$0xff]  ;;  %v512_v59 = vld [vmem:[#allocation3] sm:$0xff]  ;;  %v619_v1 = vld [vmem:[%s1682_s3 + $0x38] sm:$0xff]  ;;  %s1220_s10 = scalar_lea.vmem %s817_s21, 128 }
  0x24   : > { %1055 = vmatpush3.msra.mxu1 %v415_v29  ;;  %v618_v3 = vld [vmem:[%s1682_s3 + $0x30] sm:$0xff]  ;;  %v633_v21 = vld [vmem:[%s1684_s5 + $0x28] sm:$0xff]  ;;  %p1221_p12 = scmp.ne.s32.totalorder %s817_s21, %s1220_s10  ;;  %p1228_p2 = scmp.lt.s32.totalorder %s1226_s27, %s1220_s10 }
  0x25   : > { %1020 = vmatpush3.xpose.msra.mxu0 %v399_v4  ;;  %1056 = vmatprep.subr.mxu1 %v1298_v0  ;;  %v617_v4 = vld [vmem:[%s1682_s3 + $0x28] sm:$0xff]  ;;  %v634_v20 = vld [vmem:[%s1684_s5 + $0x30] sm:$0xff] }
  0x26   : > { %1021 = vmatprep.subr.mxu0 %v1298_v0  ;;  %1057 = vmatpush3.msra.mxu1 %v414_v30  ;;  %p1222_p13 = pnand %p1221_p12, %p1383_p4  ;;  %p1229_p3 = por %p1228_p2, %p1227_p1 }
  0x27   : > { %1058 = vmatprep.subr.mxu1 %v1298_v0 }
  0x28   : > { %1059 = vmatpush3.msra.mxu1 %v413_v31  ;;  %p1223_p0 = pneg %p1222_p13 }
  0x29   : > { %1022 = vmatpush3.xpose.msra.mxu0 %v398_v5  ;;  %1060 = vmatprep.subr.mxu1 %v1298_v0  ;;  %v616_v5 = vld [vmem:[%s1682_s3 + $0x20] sm:$0xff] }
  0x2a   : > { %1023 = vmatprep.subr.mxu0 %v1298_v0  ;;  %1061 = vmatpush3.msra.mxu1 %v412_v32  ;;  %p1230_p5 = pnand %p1229_p3, %p1223_p0 }
  0x2b   : > { %1062 = vmatprep.subr.mxu1 %v1298_v0 }
  0x2c   : > { %1063 = vmatpush3.msra.mxu1 %v411_v34  ;;  %v629_v34 = vld [vmem:[%s1684_s5 + $0x8] sm:$0xff] }
  0x2d   : > { %1024 = vmatpush3.xpose.msra.mxu0 %v397_v6  ;;  %1064 = vmatprep.subr.mxu1 %v1298_v0  ;;  %v615_v6 = vld [vmem:[%s1682_s3 + $0x18] sm:$0xff] }
  0x2e   : > { %1025 = vmatprep.subr.mxu0 %v1298_v0  ;;  %1065 = vmatpush3.msra.mxu1 %v410_v37 }
  0x2f   : > { %1066 = vmatprep.subr.mxu1 %v1298_v0 }
  0x30   : > { %1067 = vmatpush3.msra.mxu1 %v409_v39 }
  0x31   : > { %1026 = vmatpush3.xpose.msra.mxu0 %v396_v7  ;;  %1068 = vmatprep.subr.mxu1 %v1298_v0  ;;  %v614_v7 = vld [vmem:[%s1682_s3 + $0x10] sm:$0xff] }
  0x32   : > { %1027 = vmatprep.subr.mxu0 %v1298_v0  ;;  %1069 = vmatpush3.msra.mxu1 %v408_v40 }
  0x33   : > { %1070 = vmatprep.subr.mxu1 %v1298_v0 }
  0x34   : > { %1071 = vmatpush3.msra.mxu1 %v407_v41 }
  0x35   : > { %1028 = vmatpush3.xpose.msra.mxu0 %v395_v8  ;;  %1072 = vmatprep.subr.mxu1 %v1298_v0  ;;  %v613_v8 = vld [vmem:[%s1682_s3 + $0x8] sm:$0xff] }
  0x36   : > { %1029 = vmatprep.subr.mxu0 %v1298_v0  ;;  %1073 = vmatpush3.msra.mxu1 %v406_v42 }
  0x37   : > { %1074 = vmatprep.subr.mxu1 %v1298_v0 }
  0x38   : > { %1075 = vmatpush3.msra.mxu1 %v405_v43 }
  0x39   : > { %1030 = vmatpush3.xpose.msra.mxu0 %v394_v9  ;;  %1076 = vmatprep.subr.mxu1 %v1298_v0  ;;  %v612_v9 = vld [vmem:[%s1682_s3] sm:$0xff] }
  0x3a   : > { %1031 = vmatprep.subr.mxu0 %v1298_v0  ;;  %1077 = vmatpush3.msra.mxu1 %v404_v44 }
  0x3b   : > { %1078 = vmatprep.subr.mxu1 %v1298_v0 }
  0x3c   : > { %1079 = vmatpush3.msra.mxu1 %v403_v45 }
  0x3d   : > { %1032 = vmatpush3.xpose.msra.mxu0 %v393_v10  ;;  %1083 = vmatprep.subr.mxu1 %v1298_v0  ;;  %v643_v10 = vld [vmem:[%s1684_s5 + $0x78] sm:$0xff] }
  0x3e   : > { %1033 = vmatprep.subr.mxu0 %v1298_v0 }
  0x41   : > { %1034 = vmatpush3.xpose.msra.mxu0 %v392_v11  ;;  %v642_v11 = vld [vmem:[%s1684_s5 + $0x70] sm:$0xff] }
  0x42   : > { %1035 = vmatprep.subr.mxu0 %v1298_v0 }
  0x45   : > { %1036 = vmatpush3.xpose.msra.mxu0 %v391_v12  ;;  %v641_v12 = vld [vmem:[%s1684_s5 + $0x68] sm:$0xff] }
  0x46   : > { %1037 = vmatprep.subr.mxu0 %v1298_v0 }
  0x49   : > { %1038 = vmatpush3.xpose.msra.mxu0 %v390_v13  ;;  %v640_v13 = vld [vmem:[%s1684_s5 + $0x60] sm:$0xff] }
  0x4a   : > { %1039 = vmatprep.subr.mxu0 %v1298_v0 }
  0x4d   : > { %1040 = vmatpush3.xpose.msra.mxu0 %v389_v14  ;;  %v639_v14 = vld [vmem:[%s1684_s5 + $0x58] sm:$0xff] }
  0x4e   : > { %1041 = vmatprep.subr.mxu0 %v1298_v0 }
  0x51   : > { %1042 = vmatpush3.xpose.msra.mxu0 %v388_v15  ;;  %v638_v15 = vld [vmem:[%s1684_s5 + $0x50] sm:$0xff] }
  0x52   : > { %1043 = vmatprep.subr.mxu0 %v1298_v0 }
  0x55   : > { %1044 = vmatpush3.xpose.msra.mxu0 %v387_v17  ;;  %v637_v17 = vld [vmem:[%s1684_s5 + $0x48] sm:$0xff] }
  0x56   : > { %1118 = vmatprep.subr.mxu0 %v1298_v0 }
  0x58   : > { %1046 = vmatmul.mubr.f32.vlgmr.msra.gmra.mxu0 %v419_v18  ;;  %v636_v18 = vld [vmem:[%s1684_s5 + $0x40] sm:$0xff] }
  0x59   : > { %1150 = vmatprep.mubr.msk.f32.mxu0 %vm1299_vm0, %v1298_v0  ;;  %1119 = vmatpush3.msra.mxu0 %v643_v10 }
  0x5a   : > { %1120 = vmatprep.subr.mxu0 %v1298_v0 }
  0x5b   : > { %1121 = vmatpush3.msra.mxu0 %v642_v11 }
  0x5c   : > { %1122 = vmatprep.subr.mxu0 %v1298_v0 }
  0x5d   : > { %1123 = vmatpush3.msra.mxu0 %v641_v12 }
  0x5e   : > { %1124 = vmatprep.subr.mxu0 %v1298_v0 }
  0x5f   : > { %1125 = vmatpush3.msra.mxu0 %v640_v13 }
  0x60   : > { %1126 = vmatprep.subr.mxu0 %v1298_v0 }
  0x61   : > { %1127 = vmatpush3.msra.mxu0 %v639_v14 }
  0x62   : > { %1128 = vmatprep.subr.mxu0 %v1298_v0 }
  0x63   : > { %1129 = vmatpush3.msra.mxu0 %v638_v15 }
  0x64   : > { %1130 = vmatprep.subr.mxu0 %v1298_v0 }
  0x65   : > { %1131 = vmatpush3.msra.mxu0 %v637_v17 }
  0x66   : > { %1132 = vmatprep.subr.mxu0 %v1298_v0 }
  0x67   : > { %1133 = vmatpush3.msra.mxu0 %v636_v18 }
  0x68   : > { %1134 = vmatprep.subr.mxu0 %v1298_v0 }
  0x69   : > { %1135 = vmatpush3.msra.mxu0 %v635_v19 }
  0x6a   : > { %1136 = vmatprep.subr.mxu0 %v1298_v0 }
  0x6b   : > { %1137 = vmatpush3.msra.mxu0 %v634_v20 }
  0x6c   : > { %1138 = vmatprep.subr.mxu0 %v1298_v0 }
  0x6d   : > { %1139 = vmatpush3.msra.mxu0 %v633_v21 }
  0x6e   : > { %1140 = vmatprep.subr.mxu0 %v1298_v0 }
 0x118   : > { %v486_v22 = vpop.f32.mrf.mxu0 }
 0x119   : > { %v1460_v23 = vsel %vm495_vm2, %v486_v22, -1e+30  ;;  %v632_v22 = vld [vmem:[%s1684_s5 + $0x20] sm:$0xff] }
 0x11a   : > { %497 = vmax.xlane.f32.xlu0 %v1460_v23  ;;  %v1047_v24 = vpop.f32.mrf.mxu0  ;;  %1141 = vmatpush3.msra.mxu0 %v632_v22 }
 0x11b   : > { %1142 = vmatprep.subr.mxu0 %v1298_v0 }
 0x1a3   : > { %v498_v35 = vpop.xlane.xlu0 %497 }
 0x1a4   : > { %v500_v36 = vmax.f32 %v499_v33, %v498_v35  ;;  %v937_v35 = vld [vmem:[%s1683_s4] ss:$0 sm:$0xff] }
 0x1a6   : > { %v501_v38 = vsub.f32 %v499_v33, %v500_v36  ;;  %598 = vst.msk [vmem:[#allocation2] sm:$0xff] %vm382_vm1, %v500_v36  ;;  %506 = vperm.xlu0 %1212, %v500_v36   ;;  %v630_v33 = vld [vmem:[%s1684_s5 + $0x10] sm:$0xff] }
 0x1a8   : > { %v502_v57 = vmul.f32 1.442695, %v501_v38 }
 0x221   : > { %v507_v46 = vpop.permute.xlu0 %506 }
 0x222   : > { %v509_v47 = vsub.f32 %v1460_v23, %v507_v46  ;;  %v631_v23 = vld [vmem:[%s1684_s5 + $0x18] sm:$0xff] }
 0x223   : > { %1143 = vmatpush3.msra.mxu0 %v631_v23 }
 0x224   : > { %v510_v48 = vmul.f32 1.442695, %v509_v47  ;;  %1144 = vmatprep.subr.mxu0 %v1298_v0 }
 0x225   : > { %1145 = vmatpush3.msra.mxu0 %v630_v33 }
 0x226   : > { %1214 = vpow2.f32 %v510_v48  ;;  %1146 = vmatprep.subr.mxu0 %v1298_v0 }
 0x227   : > { %1216 = vpow2.f32 %v502_v57  ;;  %1147 = vmatpush3.msra.mxu0 %v629_v34 }
 0x228   : > { %1148 = vmatprep.subr.mxu0 %v1298_v0 }
 0x233   : > { %v1215_v49 = vpop.eup %1214 }
 0x234   : > { %514 = vadd.xlane.f32.xlu1 %v1215_v49  ;;  %1081 = vmatmul.mubr.f32.vlgmr.msra.gmra.mxu1 %v1215_v49  ;;  %v1217_v58 = vpop.eup %1216 }
 0x235   : > { %1115 = vmatprep.mubr.msk.f32.mxu1 %vm1299_vm0, %v1298_v0  ;;  %1084 = vmatpush3.msra.mxu1 %v627_v50  ;;  %v513_v60 = vmul.f32 %v1217_v58, %v512_v59 }
 0x236   : > { %1085 = vmatprep.subr.mxu1 %v1298_v0 }
 0x237   : > { %1086 = vmatpush3.msra.mxu1 %v626_v51 }
 0x238   : > { %1087 = vmatprep.subr.mxu1 %v1298_v0 }
 0x239   : > { %1088 = vmatpush3.msra.mxu1 %v625_v52 }
 0x23a   : > { %1089 = vmatprep.subr.mxu1 %v1298_v0 }
 0x23b   : > { %1090 = vmatpush3.msra.mxu1 %v624_v53 }
 0x23c   : > { %1091 = vmatprep.subr.mxu1 %v1298_v0 }
 0x23d   : > { %1092 = vmatpush3.msra.mxu1 %v623_v54 }
 0x23e   : > { %1093 = vmatprep.subr.mxu1 %v1298_v0 }
 0x23f   : > { %1094 = vmatpush3.msra.mxu1 %v622_v55 }
 0x240   : > { %1095 = vmatprep.subr.mxu1 %v1298_v0 }
 0x241   : > { %1096 = vmatpush3.msra.mxu1 %v621_v56 }
 0x242   : > { %1097 = vmatprep.subr.mxu1 %v1298_v0 }
 0x243   : > { %1098 = vmatpush3.msra.mxu1 %v620_v63 }
 0x244   : > { %1099 = vmatprep.subr.mxu1 %v1298_v0 }
 0x245   : > { %1100 = vmatpush3.msra.mxu1 %v619_v1 }
 0x246   : > { %1101 = vmatprep.subr.mxu1 %v1298_v0 }
 0x247   : > { %1102 = vmatpush3.msra.mxu1 %v618_v3 }
 0x248   : > { %1103 = vmatprep.subr.mxu1 %v1298_v0 }
 0x249   : > { %1104 = vmatpush3.msra.mxu1 %v617_v4 }
 0x24a   : > { %1105 = vmatprep.subr.mxu1 %v1298_v0 }
 0x24b   : > { %1106 = vmatpush3.msra.mxu1 %v616_v5 }
 0x24c   : > { %1107 = vmatprep.subr.mxu1 %v1298_v0 }
 0x24d   : > { %1108 = vmatpush3.msra.mxu1 %v615_v6 }
 0x24e   : > { %1109 = vmatprep.subr.mxu1 %v1298_v0 }
 0x24f   : > { %1110 = vmatpush3.msra.mxu1 %v614_v7 }
 0x250   : > { %1111 = vmatprep.subr.mxu1 %v1298_v0 }
 0x251   : > { %1112 = vmatpush3.msra.mxu1 %v613_v8 }
 0x252   : > { %1113 = vmatprep.subr.mxu1 %v1298_v0  ;;  %v938_v0 = vld [vmem:[%s1685_s6] ss:$0 sm:$0xff] }
 0x253   : > { %1114 = vmatpush3.msra.mxu1 %v612_v9 }
 0x2bd   : > { %v515_v61 = vpop.xlane.xlu1 %514 }
 0x2be   : > { %v516_v62 = vadd.f32 %v515_v61, %v513_v60 }
 0x2c0   : > { %518 = vst.msk [vmem:[#allocation3] sm:$0xff] %vm382_vm1, %v516_v62 }
 0x2c7   : > { %v603_v2 = vld [vmem:[#allocation3] sm:$0xff] }
 0x2c8   : > { %606 = vperm.xlu1 %1213, %v603_v2  }
 0x2cc   : > { %592 = vperm.xlu1 %1213, %v1217_v58  }
 0x2f4   : > { %v585_v24 = vpop.f32.mrf.mxu1 }
 0x2f6   : > { %v1082_v25 = vpop.f32.mrf.mxu1 }
 0x343   : > { %v607_v26 = vpop.permute.xlu1 %606 }
 0x344   : > { %1218 = vrcp.f32 %v607_v26 }
 0x347   : > { %v593_v27 = vpop.permute.xlu1 %592 }
 0x348   : > { %v595_v28 = vmul.f32 0.0, %v593_v27 }
 0x34a   : > { %v596_v29 = vadd.f32 %v595_v28, %v585_v24 }
 0x351   : > { %v1219_v30 = vpop.eup %1218 }
 0x352   : > { %v610_v31 = vmul.f32 %v1219_v30, %v596_v29 }
 0x354   : > { %v611_v32 = vadd.f32 %v610_v31, %v1449_v16  ;;  %v628_v16 = vld [vmem:[%s1684_s5] sm:$0xff] }
 0x355   : > { %1149 = vmatpush3.msra.mxu0 %v628_v16 }
 0x356   : > { %1116 = vmatmul.mubr.f32.vlgmr.msra.gmra.mxu1 %v611_v32 }
 0x416   : > { %v717_v36 = vpop.f32.mrf.mxu1 }
 0x417   : > { %v718_v37 = vadd.f32 %v937_v35, %v717_v36 }
 0x418   : > { %v1117_v38 = vpop.f32.mrf.mxu1 }
 0x419   : > { %v721_v39 = vmax.f32 %v718_v37, 0.0 }
 0x41b   : > { %1151 = vmatmul.mubr.f32.vlgmr.msra.gmra.mxu0 %v721_v39 }
 0x4db   : > { %v795_v40 = vpop.f32.mrf.mxu0 }
 0x4dc   : > { %v796_v41 = vadd.f32 %v938_v0, %v795_v40 }
 0x4dd   : > { %v1152_v42 = vpop.f32.mrf.mxu0 }
 0x4de   : > { %v799_v43 = vadd.f32 %v796_v41, %v611_v32 }
 0x4e0   : > { %800 = vst [vmem:[%s350_s20] sm:$0xff] %v799_v43 }
 0x4e1   : > { %1233 = shalt.err (!%p1230_p5)
}
 0x4e2   : > { %s1234_s16 = scalar_lea.hbm %s814_s30, 128  ;;  %s1238_s19 = scalar_lea.hbm %s1686_s7, 256 }
 0x4e3   : > { %p1235_p6 = scmp.ne.s32.totalorder %s814_s30, %s1234_s16  ;;  %p1239_p10 = scmp.lt.s32.totalorder %s814_s30, %s1686_s7 }
 0x4e4   : > { %p1240_p11 = scmp.lt.s32.totalorder %s1238_s19, %s1234_s16 }
 0x4e5   : > { %p1236_p7 = pnand %p1235_p6, %p1383_p4 }
 0x4e6   : > { %p1241_p12 = por %p1240_p11, %p1239_p10 }
 0x4e7   : > { %p1237_p9 = pneg %p1236_p7 }
 0x4e9   : > { %p1242_p13 = pnand %p1241_p12, %p1237_p9 }
 0x4eb   : > { %1245 = shalt.err (!%p1242_p13)
}
 0x4ec   : > { %1153 = dma.vmem_to_hbm [thread:$0]  (%p1383_p4), %s817_s21, 128, %s814_s30, %s802_s8  }
 0x4ed PF: > { %p1159_p0 = scmp.ge.s32.totalorder %s1296_s29, 2  ;;  %s828_s23 = sand.u32 1, %s1276_s24  }
 0x4ee   : > { %s829_s10 = scalar_lea.sflag [#allocation6], %s828_s23 }
 0x4ef   : > { %p1156_p1 = pnand %p1159_p0, %p1390_p8 }
 0x4f1   : > { %p1157_p2 = pneg %p1156_p1 }
 0x4f3   : > { %1271 = dma.done.wait (%p1157_p2), %s829_s10, 128  }
 0x4f4   : > { %1273 = vsyncadd (%p1157_p2), %s829_s10, 4294967168  ;;  %s20_s29 = sadd.s32 1, %s1296_s29   ;;  %s1689_s24 = smov %s1280_s25 }
 0x4f5   : > { %p17_p3 = scmp.ge.s32.totalorder %s20_s29, 4   ;;  %s1690_s25 = smov %s1284_s26 }
 0x4f6   : > { %s1691_s26 = smov %s1396_s14  ;;  %s1692_s27 = smov %s1292_s28 }
 0x4f7   : > { %s1693_s28 = smov %s1695_s9  ;;  %19 = sbr.rel (!%p17_p3) target bundleno = 4 (0x4), region = 97 }
 0x4fc   :  { %834 = vsyncpa [#allocation6], 1 }
 0x4fd   :  { %836 = vsyncpa [#allocation6 + $0x1], 1 }

</bundles_post_ra>
